<compile_context>
chip_gen: v6e
topology: v6e:2x2x1
jax: 0.10.0
libtpu: 0.0.40
codegen_flags: <defaults>
</compile_context>

<pallas_src>
import jax
import jax.numpy as jnp
from jax.experimental import pallas as pl
from jax.experimental.pallas import tpu as pltpu

_HPAD = 128  # every hidden width is zero-padded to a single 128-lane tile


def _leaky_relu(v, slope=0.2):
    return jnp.where(v > 0, v, slope * v)


def _disc_kernel(x_ref, y_ref, w0x_ref, w0y_ref, b_ref, w1_ref, w2_ref, w3_ref,
                 o_ref):
    """One batch tile of the fused discriminator MLP.

    Activations are (block_b, 128) f32 (real widths zero-padded); matmul
    operands are bf16 with f32 MXU accumulation.  The output layer contracts
    as W3rows @ h2^T so the stored (1, block_b) row is lane-dense.
    """
    b = b_ref[...]  # (3, 128) f32

    # hidden0: fused concat -> x @ W0x + y @ W0y   (Dropout == identity in eval)
    h = jnp.dot(x_ref[...], w0x_ref[...], preferred_element_type=jnp.float32)
    h = h + jnp.dot(y_ref[...], w0y_ref[...], preferred_element_type=jnp.float32)
    h = _leaky_relu(h + b[0:1, :])

    # hidden1
    h = jnp.dot(h.astype(jnp.bfloat16), w1_ref[...],
                preferred_element_type=jnp.float32)
    h = _leaky_relu(h + b[1:2, :])

    # hidden2 (its padded bias row also plants a constant-1 column used below)
    h = jnp.dot(h.astype(jnp.bfloat16), w2_ref[...],
                preferred_element_type=jnp.float32)
    h = _leaky_relu(h + b[2:3, :])

    # out: logits^T = W3rows @ h2^T -> (8, block_b); only row 0 is real.
    # b3 is folded into W3rows[0, ndf//4] against the constant-1 column of h2.
    logits = jax.lax.dot_general(
        w3_ref[...], h.astype(jnp.bfloat16),
        dimension_numbers=(((1,), (1,)), ((), ())),
        preferred_element_type=jnp.float32)
    row = logits[0:1, :]                               # (1, block_b), lane-dense
    o_ref[...] = pl.reciprocal(1.0 + jnp.exp(-row), approx=True)


def _pack_params(params, fx, fy):
    """Pad torch-layout params to 128-lane tiles (bf16 weights, f32 biases)."""
    (w0, b0), (w1, b1), (w2, b2), (w3, b3) = params
    ndf, n1, n2 = w0.shape[0], w1.shape[0], w2.shape[0]
    assert w0.shape[1] == fx + fy
    assert max(ndf, n1, n2 + 1) <= _HPAD, "hidden widths must fit one 128-lane tile"

    w0t = w0.T.astype(jnp.float32)                     # (fx+fy, ndf)
    w0x = jnp.zeros((fx, _HPAD), jnp.float32).at[:, :ndf].set(w0t[:fx])
    w0y = jnp.zeros((fy, _HPAD), jnp.float32).at[:, :ndf].set(w0t[fx:])
    w1p = jnp.zeros((_HPAD, _HPAD), jnp.float32).at[:ndf, :n1].set(w1.T)
    w2p = jnp.zeros((_HPAD, _HPAD), jnp.float32).at[:n1, :n2].set(w2.T)
    # output weights as rows; fold b3 into column n2 (h2[:, n2] is forced to 1)
    w3r = (jnp.zeros((8, _HPAD), jnp.float32)
           .at[0, :n2].set(w3[0])
           .at[0, n2].set(b3[0]))
    b012 = (jnp.zeros((3, _HPAD), jnp.float32)
            .at[0, :ndf].set(b0)
            .at[1, :n1].set(b1)
            .at[2, :n2].set(b2)
            .at[2, n2].set(1.0))                       # constant-1 column of h2
    bf16 = lambda w: w.astype(jnp.bfloat16)
    return bf16(w0x), bf16(w0y), b012, bf16(w1p), bf16(w2p), bf16(w3r)


def discriminator_forward(x, y, params, *, max_block_b=2048):
    """DiscriminatorNet.forward: sigmoid(MLP(cat([x, y], 1))), eval-mode dropout."""
    B, fx = x.shape
    fy = y.shape[1]
    w0x, w0y, b012, w1p, w2p, w3r = _pack_params(params, fx, fy)

    # Batch tiling: one big tile for small B (per-step overhead dominates tiny
    # tiles); for large B use max_block_b-row tiles so grid >= 2 lets v7x's two
    # TensorCores split the work.  Ragged batches are zero-padded and sliced.
    if B <= max_block_b:
        block_b, n_tiles = B, 1
    else:
        block_b = max_block_b
        n_tiles = (B + block_b - 1) // block_b
    b_pad = n_tiles * block_b
    if b_pad != B:
        x = jnp.pad(x, ((0, b_pad - B), (0, 0)))
        y = jnp.pad(y, ((0, b_pad - B), (0, 0)))
    xb = x.astype(jnp.bfloat16)
    yb = y.astype(jnp.bfloat16)

    full = lambda arr: pl.BlockSpec(arr.shape, lambda i: (0, 0))
    out = pl.pallas_call(
        _disc_kernel,
        out_shape=jax.ShapeDtypeStruct((n_tiles, block_b), jnp.float32),
        grid_spec=pltpu.PrefetchScalarGridSpec(
            num_scalar_prefetch=0,
            grid=(n_tiles,),
            in_specs=[
                pl.BlockSpec((block_b, fx), lambda i: (i, 0)),
                pl.BlockSpec((block_b, fy), lambda i: (i, 0)),
                full(w0x), full(w0y), full(b012),
                full(w1p), full(w2p), full(w3r),
            ],
            out_specs=pl.BlockSpec((1, block_b), lambda i: (i, 0)),
        ),
        compiler_params=pltpu.CompilerParams(
            dimension_semantics=("parallel",),
        ),
    )(xb, yb, w0x, w0y, b012, w1p, w2p, w3r)

    return out.reshape(-1)[:B].reshape(B, 1)


def init_params(key, n_features, ndf):
    """nn.Linear-style init: U(-1/sqrt(fan_in), 1/sqrt(fan_in)), torch layout (out, in)."""
    dims = [(n_features, ndf), (ndf, ndf // 2), (ndf // 2, ndf // 4), (ndf // 4, 1)]
    params = []
    for fan_in, fan_out in dims:
        key, kw, kb = jax.random.split(key, 3)
        bound = 1.0 / jnp.sqrt(fan_in)
        w = jax.random.uniform(kw, (fan_out, fan_in), jnp.float32, -bound, bound)
        b = jax.random.uniform(kb, (fan_out,), jnp.float32, -bound, bound)
        params.append((w, b))
    return params


def reference_forward(x, y, params):
    """Pure-JAX f32 reference for correctness check."""
    (w0, b0), (w1, b1), (w2, b2), (w3, b3) = params
    h = jnp.concatenate([x, y], axis=1)
    h = _leaky_relu(h @ w0.T + b0)
    h = _leaky_relu(h @ w1.T + b1)
    h = _leaky_relu(h @ w2.T + b2)
    return jax.nn.sigmoid(h @ w3.T + b3)


if __name__ == "__main__":
    key = jax.random.PRNGKey(0)
    kx, ky, kp = jax.random.split(key, 3)

    B = 64              # batch
    fx, fy = 16, 16     # x-features, condition-features
    n_features = fx + fy
    ndf = 32

    x = jax.random.normal(kx, (B, fx), jnp.float32)
    y = jax.random.normal(ky, (B, fy), jnp.float32)
    params = init_params(kp, n_features, ndf)

    out = discriminator_forward(x, y, params)
    out = jax.block_until_ready(out)

    ref = reference_forward(x, y, params)
    assert out.shape == (B, 1)
    assert jnp.allclose(out, ref, atol=2e-2, rtol=2e-2), "mismatch vs reference"

    print("KERNEL_OK")
</pallas_src>

<mosaic_0001>
module attributes {stable_mosaic.version = 11 : i64} {
  func.func @_disc_kernel(%arg0: i32, %arg1: memref<64x16xbf16, #tpu.memory_space<vmem>>, %arg2: memref<64x16xbf16, #tpu.memory_space<vmem>>, %arg3: memref<16x128xbf16, #tpu.memory_space<vmem>>, %arg4: memref<16x128xbf16, #tpu.memory_space<vmem>>, %arg5: memref<3x128xf32, #tpu.memory_space<vmem>>, %arg6: memref<128x128xbf16, #tpu.memory_space<vmem>>, %arg7: memref<128x128xbf16, #tpu.memory_space<vmem>>, %arg8: memref<8x128xbf16, #tpu.memory_space<vmem>>, %arg9: memref<1x64xf32, #tpu.memory_space<vmem>>) attributes {dimension_semantics = [#tpu.dimension_semantics<parallel>], iteration_bounds = array<i64: 1>, scalar_prefetch = 0 : i64, scratch_operands = 0 : i64, tpu.core_type = #tpu.core_type<tc>, window_params = [{transform_indices = @transform_0, window_bounds = array<i64: 64, 16>}, {transform_indices = @transform_1, window_bounds = array<i64: 64, 16>}, {pipeline_mode = #tpu.pipeline_mode<synchronous>, transform_indices = @transform_2, window_bounds = array<i64: 16, 128>}, {pipeline_mode = #tpu.pipeline_mode<synchronous>, transform_indices = @transform_3, window_bounds = array<i64: 16, 128>}, {pipeline_mode = #tpu.pipeline_mode<synchronous>, transform_indices = @transform_4, window_bounds = array<i64: 3, 128>}, {pipeline_mode = #tpu.pipeline_mode<synchronous>, transform_indices = @transform_5, window_bounds = array<i64: 128, 128>}, {pipeline_mode = #tpu.pipeline_mode<synchronous>, transform_indices = @transform_6, window_bounds = array<i64: 128, 128>}, {pipeline_mode = #tpu.pipeline_mode<synchronous>, transform_indices = @transform_7, window_bounds = array<i64: 8, 128>}, {transform_indices = @transform_8, window_bounds = array<i64: 1, 64>}]} {
    %c0 = arith.constant 0 : index
    %c0_0 = arith.constant 0 : index
    %0 = vector.load %arg5[%c0, %c0_0] : memref<3x128xf32, #tpu.memory_space<vmem>>, vector<3x128xf32>
    %c0_1 = arith.constant 0 : index
    %c0_2 = arith.constant 0 : index
    %1 = vector.load %arg1[%c0_1, %c0_2] : memref<64x16xbf16, #tpu.memory_space<vmem>>, vector<64x16xbf16>
    %c0_3 = arith.constant 0 : index
    %c0_4 = arith.constant 0 : index
    %2 = vector.load %arg3[%c0_3, %c0_4] : memref<16x128xbf16, #tpu.memory_space<vmem>>, vector<16x128xbf16>
    %cst = arith.constant dense<0.000000e+00> : vector<64x128xf32>
    %3 = tpu.matmul %1, %2, %cst {dimension_numbers = #tpu.dot_dimension_numbers<[1], [0], [0], [1], [0, 0, 1, 1], [], []>} : vector<64x16xbf16>, vector<16x128xbf16>, vector<64x128xf32> -> vector<64x128xf32>
    %c0_5 = arith.constant 0 : index
    %c0_6 = arith.constant 0 : index
    %4 = vector.load %arg2[%c0_5, %c0_6] : memref<64x16xbf16, #tpu.memory_space<vmem>>, vector<64x16xbf16>
    %c0_7 = arith.constant 0 : index
    %c0_8 = arith.constant 0 : index
    %5 = vector.load %arg4[%c0_7, %c0_8] : memref<16x128xbf16, #tpu.memory_space<vmem>>, vector<16x128xbf16>
    %cst_9 = arith.constant dense<0.000000e+00> : vector<64x128xf32>
    %6 = tpu.matmul %4, %5, %cst_9 {dimension_numbers = #tpu.dot_dimension_numbers<[1], [0], [0], [1], [0, 0, 1, 1], [], []>} : vector<64x16xbf16>, vector<16x128xbf16>, vector<64x128xf32> -> vector<64x128xf32>
    %7 = arith.addf %3, %6 : vector<64x128xf32>
    %8 = vector.extract_strided_slice %0 {offsets = [0, 0], sizes = [1, 128], strides = [1, 1]} : vector<3x128xf32> to vector<1x128xf32>
    %9 = vector.broadcast %8 : vector<1x128xf32> to vector<64x128xf32>
    %10 = arith.addf %7, %9 : vector<64x128xf32>
    %cst_10 = arith.constant 0.000000e+00 : f32
    %11 = vector.broadcast %cst_10 : f32 to vector<64x128xf32>
    %12 = arith.cmpf ogt, %10, %11 : vector<64x128xf32>
    %cst_11 = arith.constant 2.000000e-01 : f32
    %13 = vector.broadcast %cst_11 : f32 to vector<64x128xf32>
    %14 = arith.mulf %13, %10 : vector<64x128xf32>
    %15 = arith.select %12, %10, %14 : vector<64x128xi1>, vector<64x128xf32>
    %16 = arith.truncf %15 : vector<64x128xf32> to vector<64x128xbf16>
    %c0_12 = arith.constant 0 : index
    %c0_13 = arith.constant 0 : index
    %17 = vector.load %arg6[%c0_12, %c0_13] : memref<128x128xbf16, #tpu.memory_space<vmem>>, vector<128x128xbf16>
    %cst_14 = arith.constant dense<0.000000e+00> : vector<64x128xf32>
    %18 = tpu.matmul %16, %17, %cst_14 {dimension_numbers = #tpu.dot_dimension_numbers<[1], [0], [0], [1], [0, 0, 1, 1], [], []>} : vector<64x128xbf16>, vector<128x128xbf16>, vector<64x128xf32> -> vector<64x128xf32>
    %19 = vector.extract_strided_slice %0 {offsets = [1, 0], sizes = [1, 128], strides = [1, 1]} : vector<3x128xf32> to vector<1x128xf32>
    %20 = vector.broadcast %19 : vector<1x128xf32> to vector<64x128xf32>
    %21 = arith.addf %18, %20 : vector<64x128xf32>
    %cst_15 = arith.constant 0.000000e+00 : f32
    %22 = vector.broadcast %cst_15 : f32 to vector<64x128xf32>
    %23 = arith.cmpf ogt, %21, %22 : vector<64x128xf32>
    %cst_16 = arith.constant 2.000000e-01 : f32
    %24 = vector.broadcast %cst_16 : f32 to vector<64x128xf32>
    %25 = arith.mulf %24, %21 : vector<64x128xf32>
    %26 = arith.select %23, %21, %25 : vector<64x128xi1>, vector<64x128xf32>
    %27 = arith.truncf %26 : vector<64x128xf32> to vector<64x128xbf16>
    %c0_17 = arith.constant 0 : index
    %c0_18 = arith.constant 0 : index
    %28 = vector.load %arg7[%c0_17, %c0_18] : memref<128x128xbf16, #tpu.memory_space<vmem>>, vector<128x128xbf16>
    %cst_19 = arith.constant dense<0.000000e+00> : vector<64x128xf32>
    %29 = tpu.matmul %27, %28, %cst_19 {dimension_numbers = #tpu.dot_dimension_numbers<[1], [0], [0], [1], [0, 0, 1, 1], [], []>} : vector<64x128xbf16>, vector<128x128xbf16>, vector<64x128xf32> -> vector<64x128xf32>
    %30 = vector.extract_strided_slice %0 {offsets = [2, 0], sizes = [1, 128], strides = [1, 1]} : vector<3x128xf32> to vector<1x128xf32>
    %31 = vector.broadcast %30 : vector<1x128xf32> to vector<64x128xf32>
    %32 = arith.addf %29, %31 : vector<64x128xf32>
    %cst_20 = arith.constant 0.000000e+00 : f32
    %33 = vector.broadcast %cst_20 : f32 to vector<64x128xf32>
    %34 = arith.cmpf ogt, %32, %33 : vector<64x128xf32>
    %cst_21 = arith.constant 2.000000e-01 : f32
    %35 = vector.broadcast %cst_21 : f32 to vector<64x128xf32>
    %36 = arith.mulf %35, %32 : vector<64x128xf32>
    %37 = arith.select %34, %32, %36 : vector<64x128xi1>, vector<64x128xf32>
    %c0_22 = arith.constant 0 : index
    %c0_23 = arith.constant 0 : index
    %38 = vector.load %arg8[%c0_22, %c0_23] : memref<8x128xbf16, #tpu.memory_space<vmem>>, vector<8x128xbf16>
    %39 = arith.truncf %37 : vector<64x128xf32> to vector<64x128xbf16>
    %cst_24 = arith.constant dense<0.000000e+00> : vector<8x64xf32>
    %40 = tpu.matmul %38, %39, %cst_24 {dimension_numbers = #tpu.dot_dimension_numbers<[1], [1], [0], [0], [0, 0, 1, 0], [], []>} : vector<8x128xbf16>, vector<64x128xbf16>, vector<8x64xf32> -> vector<8x64xf32>
    %41 = vector.extract_strided_slice %40 {offsets = [0, 0], sizes = [1, 64], strides = [1, 1]} : vector<8x64xf32> to vector<1x64xf32>
    %cst_25 = arith.constant 0.000000e+00 : f32
    %42 = vector.broadcast %cst_25 : f32 to vector<1x64xf32>
    %43 = arith.subf %42, %41 : vector<1x64xf32>
    %44 = math.exp %43 : vector<1x64xf32>
    %cst_26 = arith.constant 1.000000e+00 : f32
    %45 = vector.broadcast %cst_26 : f32 to vector<1x64xf32>
    %46 = arith.addf %45, %44 : vector<1x64xf32>
    %47 = tpu.reciprocal %46 {approx = true} : vector<1x64xf32> -> vector<1x64xf32>
    %c0_27 = arith.constant 0 : index
    %c0_28 = arith.constant 0 : index
    %48 = vector.load %arg9[%c0_27, %c0_28] : memref<1x64xf32, #tpu.memory_space<vmem>>, vector<1x64xf32>
    tpu.vector_store %arg9[%c0_27, %c0_28], %47 {strides = array<i32>} : memref<1x64xf32, #tpu.memory_space<vmem>>, vector<1x64xf32>,
    return
  }
  func.func @transform_0(%arg0: i32) -> (i32, i32) {
    %c0_i32 = arith.constant 0 : i32
    %c0_i32_0 = arith.constant 0 : i32
    return %arg0, %c0_i32 : i32, i32
  }
  func.func @transform_1(%arg0: i32) -> (i32, i32) {
    %c0_i32 = arith.constant 0 : i32
    %c0_i32_0 = arith.constant 0 : i32
    return %arg0, %c0_i32 : i32, i32
  }
  func.func @transform_2(%arg0: i32) -> (i32, i32) {
    %c0_i32 = arith.constant 0 : i32
    %c0_i32_0 = arith.constant 0 : i32
    %c0_i32_1 = arith.constant 0 : i32
    return %c0_i32, %c0_i32_0 : i32, i32
  }
  func.func @transform_3(%arg0: i32) -> (i32, i32) {
    %c0_i32 = arith.constant 0 : i32
    %c0_i32_0 = arith.constant 0 : i32
    %c0_i32_1 = arith.constant 0 : i32
    return %c0_i32, %c0_i32_0 : i32, i32
  }
  func.func @transform_4(%arg0: i32) -> (i32, i32) {
    %c0_i32 = arith.constant 0 : i32
    %c0_i32_0 = arith.constant 0 : i32
    %c0_i32_1 = arith.constant 0 : i32
    return %c0_i32, %c0_i32_0 : i32, i32
  }
  func.func @transform_5(%arg0: i32) -> (i32, i32) {
    %c0_i32 = arith.constant 0 : i32
    %c0_i32_0 = arith.constant 0 : i32
    %c0_i32_1 = arith.constant 0 : i32
    return %c0_i32, %c0_i32_0 : i32, i32
  }
  func.func @transform_6(%arg0: i32) -> (i32, i32) {
    %c0_i32 = arith.constant 0 : i32
    %c0_i32_0 = arith.constant 0 : i32
    %c0_i32_1 = arith.constant 0 : i32
    return %c0_i32, %c0_i32_0 : i32, i32
  }
  func.func @transform_7(%arg0: i32) -> (i32, i32) {
    %c0_i32 = arith.constant 0 : i32
    %c0_i32_0 = arith.constant 0 : i32
    %c0_i32_1 = arith.constant 0 : i32
    return %c0_i32, %c0_i32_0 : i32, i32
  }
  func.func @transform_8(%arg0: i32) -> (i32, i32) {
    %c0_i32 = arith.constant 0 : i32
    %c0_i32_0 = arith.constant 0 : i32
    return %arg0, %c0_i32 : i32, i32
  }
}

</mosaic_0001>

<bundles_post_ra>
// kernel: tpu_custom_call.1
= control target key start
LH: loop header
LB: loop body
LE: loop exit
PB: predicated region body
PF: predicated region fallthrough
CT: control target
= control target key end

     0   :  { %13 = vsyncpa [#allocation3], 0  ;;  %s1066_s0 = inlined_call_operand.vmem [shape: bf16[64,16], index: 0, kind: input, shape index: {}]   ;;  %s1067_s1 = inlined_call_operand.vmem [shape: bf16[64,16], index: 1, kind: input, shape index: {}]   ;;  %s1068_s2 = inlined_call_operand.vmem [shape: bf16[16,128], index: 2, kind: input, shape index: {}]   ;;  %s1069_s3 = inlined_call_operand.vmem [shape: bf16[16,128], index: 3, kind: input, shape index: {}]   ;;  %s1070_s4 = inlined_call_operand.vmem [shape: f32[3,128], index: 4, kind: input, shape index: {}]   ;;  %s1071_s5 = inlined_call_operand.vmem [shape: bf16[128,128], index: 5, kind: input, shape index: {}]   ;;  %s1072_s6 = inlined_call_operand.hbm [shape: bf16[128,128], index: 6, kind: input, shape index: {}]   ;;  %s1073_s7 = inlined_call_operand.vmem [shape: bf16[8,128], index: 7, kind: input, shape index: {}]   ;;  %s1074_s8 = inlined_call_operand.hbm [shape: f32[1,64], index: 8, kind: output, shape index: {}]  }
   0x1   :  { %14 = vsyncpa [#allocation4], 0  ;;  %s931_s27 = smov [#allocation2]  }
   0x2   :  { %s32_s28 = sshll.u32 %s931_s27, 4  ;;  %s33_s28 = int_to_ptr.vmem [resolvable:$true] %s32_s28 }
   0x3   :  { %s895_s29 = scalar_lea.vmem %s33_s28, 1024  ;;  %p900_p1 = scmp.lt.s32.totalorder %s33_s28, %s33_s28 }
   0x4   :  { %p896_p0 = scmp.ne.s32.totalorder %s33_s28, %s895_s29  ;;  %p901_p2 = scmp.lt.s32.totalorder %s895_s29, %s895_s29 }
   0x6   :  { %p902_p3 = por %p901_p2, %p900_p1 }
   0x8   :  { %p903_p4 = pnand %p902_p3, %p896_p0 }
   0xa   :  { %906 = shalt.err (!%p903_p4)
}
   0xb   :  { %s932_s30 = smov 64   ;;  %s933_s9 = smov 4  }
   0xc   :  { %38 = dma.hbm_to_vmem [thread:$0]  %s1072_s6, 1024, %s33_s28, [#allocation3], %s932_s30, %s932_s30, %s933_s9  }
   0xd   :  { %927 = dma.done.wait [#allocation3], 1024  }
   0xe   :  { %928 = vsyncadd [#allocation3], 4294966272  ;;  %v857_v0 = vld [vmem:[%s1069_s3] sm:$0xff]   ;;  %vm92_vm0 = vcmask 130048   ;;  %v859_v2 = vld [vmem:[%s1067_s1 + $0x8] sm:$0xff]   ;;  %v273_v28 = vlaneseq  ;;  %s936_s21 = smov [#allocation5]  }
   0xf   :  { %v858_v1 = vld [vmem:[%s1067_s1] sm:$0xff]   ;;  %771 = vmatprep.subr.bf16.mxu1 %v857_v0  ;;  %v861_v4 = vld [vmem:[%s1067_s1 + $0x10] sm:$0xff]   ;;  %v862_v5 = vld [vmem:[%s1067_s1 + $0x18] sm:$0xff]   ;;  %s689_s22 = sshll.u32 %s936_s21, 4  ;;  %s690_s22 = int_to_ptr.vmem [resolvable:$true] %s689_s22 }
  0x10   :  { %772 = vmatpush3.bf16.msra.mxu1 %v857_v0  ;;  %773 = vmatprep.mubr.msk.bf16.mxu1 %vm92_vm0, %v858_v1  ;;  %v860_v3 = vld [vmem:[%s1068_s2] sm:$0xff]   ;;  %v864_v7 = vld [vmem:[%s1066_s0 + $0x8] sm:$0xff]   ;;  %v865_v8 = vld [vmem:[%s1066_s0 + $0x10] sm:$0xff]   ;;  %v1047_v31 = vshrl.u32 %v273_v28, 7  ;;  %s907_s23 = scalar_lea.vmem %s690_s22, 16  ;;  %p912_p6 = scmp.lt.s32.totalorder %s690_s22, %s690_s22 }
  0x11   :  { %781 = vmatprep.subr.bf16.mxu1 %v860_v3  ;;  %v863_v6 = vld [vmem:[%s1066_s0] sm:$0xff]   ;;  %v866_v9 = vld [vmem:[%s1066_s0 + $0x18] sm:$0xff]   ;;  %v868_v11 = vld [vmem:[%s1071_s5 + $0x30] sm:$0xff]   ;;  %p908_p5 = scmp.ne.s32.totalorder %s690_s22, %s907_s23 }
  0x12   :  { %v867_v10 = vld [vmem:[%s1071_s5 + $0x38] sm:$0xff]   ;;  %v869_v12 = vld [vmem:[%s1071_s5 + $0x28] sm:$0xff]   ;;  %v870_v13 = vld [vmem:[%s1071_s5 + $0x20] sm:$0xff]   ;;  %v275_v34 = vsub.s32 0, %v1047_v31 }
  0x13   :  { %774 = vmatmul.mubr.msk.bf16.vlgmr.msra.gmra.mxu1 %vm92_vm0, %v859_v2  ;;  %791 = vmatprep.subr.bf16.mxu0 %v867_v10  ;;  %v871_v14 = vld [vmem:[%s1071_s5 + $0x18] sm:$0xff]   ;;  %v872_v15 = vld [vmem:[%s1071_s5 + $0x10] sm:$0xff]   ;;  %v873_v16 = vld [vmem:[%s1071_s5 + $0x8] sm:$0xff]  }
  0x14   :  { %782 = vmatpush3.bf16.msra.mxu1 %v860_v3  ;;  %777 = vmatprep.mubr.msk.bf16.mxu1 %vm92_vm0, %v861_v4  ;;  %v874_v17 = vld [vmem:[%s1071_s5] sm:$0xff]   ;;  %v875_v18 = vld [vmem:[#allocation2 + $0x38] sm:$0xff]   ;;  %v876_v19 = vld [vmem:[#allocation2 + $0x30] sm:$0xff]  }
  0x15   :  { %792 = vmatpush3.bf16.msra.mxu0 %v867_v10  ;;  %815 = vmatprep.subr.bf16.mxu1 %v875_v18  ;;  %v877_v20 = vld [vmem:[#allocation2 + $0x28] sm:$0xff]   ;;  %v878_v21 = vld [vmem:[#allocation2 + $0x20] sm:$0xff]   ;;  %v879_v22 = vld [vmem:[#allocation2 + $0x18] sm:$0xff]  }
  0x16   :  { %793 = vmatprep.subr.bf16.mxu0 %v868_v11  ;;  %v1053_v35 = vld [vmem:[%s1070_s4] sm:$0x7] }
  0x17   :  { %v276_v39 = vrot.slane %v1053_v35, %v275_v34 }
  0x19   :  { %794 = vmatpush3.bf16.msra.mxu0 %v868_v11 }
  0x1a   :  { %795 = vmatprep.subr.bf16.mxu0 %v869_v12 }
  0x1b   :  { %778 = vmatmul.mubr.msk.bf16.gmra.mxu1 %vm92_vm0, %v862_v5 }
  0x1c   :  { %783 = vmatprep.mubr.msk.bf16.mxu1 %vm92_vm0, %v863_v6 }
  0x1d   :  { %796 = vmatpush3.bf16.msra.mxu0 %v869_v12 }
  0x1e   :  { %797 = vmatprep.subr.bf16.mxu0 %v870_v13 }
  0x21   :  { %798 = vmatpush3.bf16.msra.mxu0 %v870_v13 }
  0x22   :  { %799 = vmatprep.subr.bf16.mxu0 %v871_v14 }
  0x23   :  { %784 = vmatmul.mubr.msk.bf16.vlgmr.msra.gmra.mxu1 %vm92_vm0, %v864_v7 }
  0x24   :  { %787 = vmatprep.mubr.msk.bf16.mxu1 %vm92_vm0, %v865_v8  ;;  %816 = vmatpush3.bf16.msra.mxu1 %v875_v18  ;;  %v882_v18 = vld [vmem:[#allocation2] sm:$0xff]  }
  0x25   :  { %800 = vmatpush3.bf16.msra.mxu0 %v871_v14  ;;  %817 = vmatprep.subr.bf16.mxu1 %v876_v19 }
  0x26   :  { %801 = vmatprep.subr.bf16.mxu0 %v872_v15 }
  0x28   :  { %818 = vmatpush3.bf16.msra.mxu1 %v876_v19  ;;  %v331_v19 = vsub.s32 1, %v1047_v31 }
  0x29   :  { %802 = vmatpush3.bf16.msra.mxu0 %v872_v15  ;;  %819 = vmatprep.subr.bf16.mxu1 %v877_v20 }
  0x2a   :  { %803 = vmatprep.subr.bf16.mxu0 %v873_v16 }
  0x2b   :  { %788 = vmatmul.mubr.msk.bf16.gmra.mxu1 %vm92_vm0, %v866_v9 }
  0x2c   :  { %820 = vmatpush3.bf16.msra.mxu1 %v877_v20  ;;  %v332_v20 = vrot.slane %v1053_v35, %v331_v19 }
  0x2d   :  { %804 = vmatpush3.bf16.msra.mxu0 %v873_v16  ;;  %821 = vmatprep.subr.bf16.mxu1 %v878_v21  ;;  %v880_v16 = vld [vmem:[#allocation2 + $0x10] sm:$0xff]  }
  0x2e   :  { %805 = vmatprep.subr.bf16.mxu0 %v874_v17 }
  0x30   :  { %822 = vmatpush3.bf16.msra.mxu1 %v878_v21 }
  0x31   :  { %806 = vmatpush3.bf16.msra.mxu0 %v874_v17  ;;  %823 = vmatprep.subr.bf16.mxu1 %v879_v22  ;;  %v881_v17 = vld [vmem:[#allocation2 + $0x8] sm:$0xff]  }
  0x34   :  { %824 = vmatpush3.bf16.msra.mxu1 %v879_v22 }
  0x35   :  { %825 = vmatprep.subr.bf16.mxu1 %v880_v16 }
  0x38   :  { %826 = vmatpush3.bf16.msra.mxu1 %v880_v16 }
  0x39   :  { %827 = vmatprep.subr.bf16.mxu1 %v881_v17 }
  0x3c   :  { %828 = vmatpush3.bf16.msra.mxu1 %v881_v17 }
  0x3d   :  { %829 = vmatprep.subr.bf16.mxu1 %v882_v18 }
  0x40   :  { %830 = vmatpush3.bf16.msra.mxu1 %v882_v18 }
  0xd3   :  { %v775_v23 = vpop.f32.mrf.mxu1 }
  0xd5   :  { %v139_v24 = vpop.f32.mrf.mxu1 }
  0xd7   :  { %v776_v25 = vpop.f32.mrf.mxu1 }
  0xd9   :  { %v142_v26 = vpop.f32.mrf.mxu1 }
  0xdb   :  { %v779_v27 = vpop.f32.mrf.mxu1 }
  0xdd   :  { %v155_v29 = vpop.f32.mrf.mxu1 }
  0xdf   :  { %v780_v30 = vpop.f32.mrf.mxu1 }
  0xe1   :  { %v158_v32 = vpop.f32.mrf.mxu1 }
  0xe3   :  { %v785_v33 = vpop.f32.mrf.mxu1 }
  0xe4   :  { %v251_v38 = vadd.f32 %v785_v33, %v775_v23 }
  0xe5   :  { %v242_v36 = vpop.f32.mrf.mxu1 }
  0xe6   :  { %v243_v37 = vadd.f32 %v242_v36, %v139_v24  ;;  %v279_v46 = vadd.f32 %v276_v39, %v251_v38 }
  0xe7   :  { %v786_v40 = vpop.f32.mrf.mxu1 }
  0xe8   :  { %v254_v41 = vadd.f32 %v786_v40, %v776_v25  ;;  %v277_v42 = vadd.f32 %v276_v39, %v243_v37  ;;  %v295_v54 = vmul.f32 0.2, %v279_v46  ;;  %vm287_vm4 = vcmp.gt.f32.partialorder %v279_v46, 0.0 }
  0xe9   :  { %v245_v43 = vpop.f32.mrf.mxu1 }
  0xea   :  { %v280_v44 = vadd.f32 %v276_v39, %v254_v41  ;;  %v246_v45 = vadd.f32 %v245_v43, %v142_v26  ;;  %v293_v51 = vmul.f32 0.2, %v277_v42  ;;  %vm285_vm3 = vcmp.gt.f32.partialorder %v277_v42, 0.0 }
  0xeb   :  { %v789_v47 = vpop.f32.mrf.mxu1  ;;  %v303_v3 = vsel %vm287_vm4, %v279_v46, %v295_v54 }
  0xec   :  { %v278_v48 = vadd.f32 %v276_v39, %v246_v45  ;;  %v296_v49 = vmul.f32 0.2, %v280_v44  ;;  %vm288_vm1 = vcmp.gt.f32.partialorder %v280_v44, 0.0  ;;  %v267_v55 = vadd.f32 %v789_v47, %v779_v27 }
  0xed   :  { %v258_v50 = vpop.f32.mrf.mxu1  ;;  %v301_v0 = vsel %vm285_vm3, %v277_v42, %v293_v51 }
  0xee   :  { %v259_v52 = vadd.f32 %v258_v50, %v155_v29  ;;  %vm286_vm2 = vcmp.gt.f32.partialorder %v278_v48, 0.0  ;;  %v294_v53 = vmul.f32 0.2, %v278_v48  ;;  %v304_v61 = vsel %vm288_vm1, %v280_v44, %v296_v49 }
  0xef   :  { %v790_v56 = vpop.f32.mrf.mxu1  ;;  %v283_v1 = vadd.f32 %v276_v39, %v267_v55  ;;  %v310_v6 = vpack.c.bf16 %v304_v61, %v303_v3  ;;  %vm935_vm1 = vmmov 0  }
  0xf0   :  { %v281_v57 = vadd.f32 %v276_v39, %v259_v52  ;;  %v270_v58 = vadd.f32 %v790_v56, %v780_v30  ;;  %v302_v60 = vsel %vm286_vm2, %v278_v48, %v294_v53 }
  0xf1   :  { %v261_v59 = vpop.f32.mrf.mxu1  ;;  %v309_v2 = vpack.c.bf16 %v302_v60, %v301_v0  ;;  %v299_v9 = vmul.f32 0.2, %v283_v1  ;;  %vm291_vm8 = vcmp.gt.f32.partialorder %v283_v1, 0.0 }
  0xf2   :  { %v284_v62 = vadd.f32 %v276_v39, %v270_v58  ;;  %v262_v63 = vadd.f32 %v261_v59, %v158_v32  ;;  %v297_v4 = vmul.f32 0.2, %v281_v57  ;;  %vm289_vm5 = vcmp.gt.f32.partialorder %v281_v57, 0.0 }
  0xf3   :  { %807 = vmatprep.mubr.bf16.mxu0 %v309_v2  ;;  %v307_v14 = vsel %vm291_vm8, %v283_v1, %v299_v9  ;;  %v934_v59 = vmov 0.0  }
  0xf4   :  { %v282_v5 = vadd.f32 %v276_v39, %v262_v63  ;;  %v300_v7 = vmul.f32 0.2, %v284_v62  ;;  %vm292_vm6 = vcmp.gt.f32.partialorder %v284_v62, 0.0  ;;  %808 = vmatmul.mubr.bf16.vlgmr.msra.gmra.mxu0 %v310_v6  ;;  %v305_v10 = vsel %vm289_vm5, %v281_v57, %v297_v4  ;;  %839 = vmatprep.subr.bf16.mxu0 %v934_v59 }
  0xf6   :  { %vm290_vm7 = vcmp.gt.f32.partialorder %v282_v5, 0.0  ;;  %v298_v8 = vmul.f32 0.2, %v282_v5  ;;  %v308_v13 = vsel %vm292_vm6, %v284_v62, %v300_v7  ;;  %v492_v62 = vsub.s32 2, %v1047_v31 }
  0xf7   :  { %v312_v15 = vpack.c.bf16 %v308_v13, %v307_v14 }
  0xf8   :  { %v306_v11 = vsel %vm290_vm7, %v282_v5, %v298_v8  ;;  %v493_v1 = vrot.slane %v1053_v35, %v492_v62 }
  0xf9   :  { %v311_v12 = vpack.c.bf16 %v306_v11, %v305_v10 }
  0xfb   :  { %811 = vmatprep.mubr.bf16.mxu0 %v311_v12 }
  0xfc   :  { %812 = vmatmul.mubr.bf16.gmra.mxu0 %v312_v15 }
  0xfd   :  { %847 = vmatprep.mubr.msk.bf16.mxu0 %vm935_vm1, %v934_v59 }
 0x1b4   :  { %v809_v21 = vpop.f32.mrf.mxu0 }
 0x1b5   :  { %v424_v24 = vadd.f32 %v809_v21, %v332_v20 }
 0x1b6   :  { %v415_v22 = vpop.f32.mrf.mxu0 }
 0x1b7   :  { %v416_v23 = vadd.f32 %v415_v22, %v332_v20  ;;  %v456_v32 = vmul.f32 0.2, %v424_v24  ;;  %vm448_vm11 = vcmp.gt.f32.partialorder %v424_v24, 0.0 }
 0x1b8   :  { %v810_v25 = vpop.f32.mrf.mxu0 }
 0x1b9   :  { %v427_v26 = vadd.f32 %v810_v25, %v332_v20  ;;  %v454_v28 = vmul.f32 0.2, %v416_v23  ;;  %vm446_vm10 = vcmp.gt.f32.partialorder %v416_v23, 0.0  ;;  %v464_v41 = vsel %vm448_vm11, %v424_v24, %v456_v32 }
 0x1ba   :  { %v418_v27 = vpop.f32.mrf.mxu0 }
 0x1bb   :  { %vm449_vm9 = vcmp.gt.f32.partialorder %v427_v26, 0.0  ;;  %v457_v29 = vmul.f32 0.2, %v427_v26  ;;  %v419_v30 = vadd.f32 %v418_v27, %v332_v20  ;;  %v462_v39 = vsel %vm446_vm10, %v416_v23, %v454_v28 }
 0x1bc   :  { %v813_v33 = vpop.f32.mrf.mxu0  ;;  %vm681_vm10 = vcmask 516096  }
 0x1bd   :  { %vm447_vm12 = vcmp.gt.f32.partialorder %v419_v30, 0.0  ;;  %v455_v34 = vmul.f32 0.2, %v419_v30  ;;  %v465_v36 = vsel %vm449_vm9, %v427_v26, %v457_v29  ;;  %v440_v42 = vadd.f32 %v813_v33, %v332_v20  ;;  %v631_v33 = vld [vmem:[%s1073_s7] sm:$0xf]  ;;  %s911_s7 = scalar_lea.vmem %s690_s22, 32 }
 0x1be   :  { %v431_v37 = vpop.f32.mrf.mxu0  ;;  %v471_v45 = vpack.c.bf16 %v465_v36, %v464_v41  ;;  %p913_p7 = scmp.lt.s32.totalorder %s911_s7, %s907_s23 }
 0x1bf   :  { %v432_v38 = vadd.f32 %v431_v37, %v332_v20  ;;  %v463_v40 = vsel %vm447_vm12, %v419_v30, %v455_v34  ;;  %v460_v51 = vmul.f32 0.2, %v440_v42  ;;  %vm452_vm15 = vcmp.gt.f32.partialorder %v440_v42, 0.0 }
 0x1c0   :  { %v814_v43 = vpop.f32.mrf.mxu0  ;;  %v470_v44 = vpack.c.bf16 %v463_v40, %v462_v39  ;;  %p914_p8 = por %p913_p7, %p912_p6 }
 0x1c1   :  { %v443_v46 = vadd.f32 %v814_v43, %v332_v20  ;;  %v458_v48 = vmul.f32 0.2, %v432_v38  ;;  %vm450_vm14 = vcmp.gt.f32.partialorder %v432_v38, 0.0  ;;  %v468_v57 = vsel %vm452_vm15, %v440_v42, %v460_v51 }
 0x1c2   :  { %v434_v47 = vpop.f32.mrf.mxu0  ;;  %831 = vmatprep.mubr.bf16.mxu1 %v470_v44  ;;  %p915_p9 = pnand %p914_p8, %p908_p5 }
 0x1c3   :  { %vm453_vm13 = vcmp.gt.f32.partialorder %v443_v46, 0.0  ;;  %v461_v49 = vmul.f32 0.2, %v443_v46  ;;  %v435_v50 = vadd.f32 %v434_v47, %v332_v20  ;;  %832 = vmatmul.mubr.bf16.vlgmr.msra.gmra.mxu1 %v471_v45  ;;  %v466_v54 = vsel %vm450_vm14, %v432_v38, %v458_v48 }
 0x1c5   :  { %vm451_vm0 = vcmp.gt.f32.partialorder %v435_v50, 0.0  ;;  %v459_v52 = vmul.f32 0.2, %v435_v50  ;;  %v469_v53 = vsel %vm453_vm13, %v443_v46, %v461_v49 }
 0x1c6   :  { %v473_v58 = vpack.c.bf16 %v469_v53, %v468_v57 }
 0x1c7   :  { %v467_v55 = vsel %vm451_vm0, %v435_v50, %v459_v52 }
 0x1c8   :  { %v472_v56 = vpack.c.bf16 %v467_v55, %v466_v54 }
 0x1ca   :  { %835 = vmatprep.mubr.bf16.mxu1 %v472_v56 }
 0x1cb   :  { %836 = vmatmul.mubr.bf16.gmra.mxu1 %v473_v58 }
 0x283   :  { %v833_v60 = vpop.f32.mrf.mxu1 }
 0x284   :  { %v585_v17 = vadd.f32 %v833_v60, %v493_v1 }
 0x285   :  { %v576_v61 = vpop.f32.mrf.mxu1 }
 0x286   :  { %v617_v21 = vmul.f32 0.2, %v585_v17  ;;  %vm609_vm7 = vcmp.gt.f32.partialorder %v585_v17, 0.0  ;;  %v577_v25 = vadd.f32 %v576_v61, %v493_v1 }
 0x287   :  { %v834_v63 = vpop.f32.mrf.mxu1 }
 0x288   :  { %v588_v35 = vadd.f32 %v834_v63, %v493_v1  ;;  %v625_v24 = vsel %vm609_vm7, %v585_v17, %v617_v21  ;;  %v615_v28 = vmul.f32 0.2, %v577_v25  ;;  %vm607_vm9 = vcmp.gt.f32.partialorder %v577_v25, 0.0 }
 0x289   :  { %v579_v0 = vpop.f32.mrf.mxu1 }
 0x28a   :  { %v618_v20 = vmul.f32 0.2, %v588_v35  ;;  %vm610_vm6 = vcmp.gt.f32.partialorder %v588_v35, 0.0  ;;  %v580_v23 = vadd.f32 %v579_v0, %v493_v1  ;;  %v623_v30 = vsel %vm607_vm9, %v577_v25, %v615_v28 }
 0x28b   :  { %v837_v2 = vpop.f32.mrf.mxu1 }
 0x28c   :  { %v601_v3 = vadd.f32 %v837_v2, %v493_v1  ;;  %v626_v22 = vsel %vm610_vm6, %v588_v35, %v618_v20  ;;  %v616_v27 = vmul.f32 0.2, %v580_v23  ;;  %vm608_vm8 = vcmp.gt.f32.partialorder %v580_v23, 0.0 }
 0x28d   :  { %v592_v4 = vpop.f32.mrf.mxu1  ;;  %v633_v26 = vpack.c.bf16 %v626_v22, %v625_v24 }
 0x28e   :  { %v621_v6 = vmul.f32 0.2, %v601_v3  ;;  %vm613_vm2 = vcmp.gt.f32.partialorder %v601_v3, 0.0  ;;  %v593_v12 = vadd.f32 %v592_v4, %v493_v1  ;;  %v624_v29 = vsel %vm608_vm8, %v580_v23, %v616_v27 }
 0x28f   :  { %v838_v5 = vpop.f32.mrf.mxu1  ;;  %v632_v32 = vpack.c.bf16 %v624_v29, %v623_v30 }
 0x290   :  { %v604_v7 = vadd.f32 %v838_v5, %v493_v1  ;;  %v629_v11 = vsel %vm613_vm2, %v601_v3, %v621_v6  ;;  %v619_v15 = vmul.f32 0.2, %v593_v12  ;;  %vm611_vm5 = vcmp.gt.f32.partialorder %v593_v12, 0.0 }
 0x291   :  { %v595_v8 = vpop.f32.mrf.mxu1 }
 0x292   :  { %vm614_vm3 = vcmp.gt.f32.partialorder %v604_v7, 0.0  ;;  %v622_v9 = vmul.f32 0.2, %v604_v7  ;;  %v596_v10 = vadd.f32 %v595_v8, %v493_v1  ;;  %v627_v18 = vsel %vm611_vm5, %v593_v12, %v619_v15 }
 0x294   :  { %v630_v13 = vsel %vm614_vm3, %v604_v7, %v622_v9  ;;  %v620_v31 = vmul.f32 0.2, %v596_v10  ;;  %vm612_vm4 = vcmp.gt.f32.partialorder %v596_v10, 0.0 }
 0x295   :  { %v635_v14 = vpack.c.bf16 %v630_v13, %v629_v11 }
 0x296   :  { %v628_v16 = vsel %vm612_vm4, %v596_v10, %v620_v31 }
 0x297   :  { %840 = vmatpush3.bf16.xpose.msra.mxu0 %v635_v14  ;;  %v634_v19 = vpack.c.bf16 %v628_v16, %v627_v18 }
 0x298   :  { %841 = vmatprep.subr.bf16.mxu0 %v934_v59 }
 0x29f   :  { %842 = vmatpush3.bf16.xpose.msra.mxu0 %v634_v19 }
 0x2a0   :  { %843 = vmatprep.subr.bf16.mxu0 %v934_v59 }
 0x2a7   :  { %844 = vmatpush3.bf16.xpose.msra.mxu0 %v633_v26 }
 0x2a8   :  { %845 = vmatprep.subr.bf16.mxu0 %v934_v59 }
 0x2af   :  { %846 = vmatpush3.bf16.xpose.msra.mxu0 %v632_v32 }
 0x2b6   :  { %848 = vmatmul.mubr.bf16.vlgmr.msra.gmra.mxu0 %v631_v33 }
 0x376   :  { %v670_v34 = vpop.f32.mrf.mxu0 }
 0x377   :  { %v676_v36 = vsub.f32 0.0, %v670_v34 }
 0x378   :  { %v849_v37 = vpop.f32.mrf.mxu0 }
 0x379   :  { %v677_v38 = vmul.f32 1.442695, %v676_v36 }
 0x37a   :  { %v673_v39 = vpop.f32.mrf.mxu0 }
 0x37b   :  { %883 = vpow2.f32 %v677_v38 }
 0x37c   :  { %v850_v40 = vpop.f32.mrf.mxu0 }
 0x388   :  { %v884_v41 = vpop.eup %883 }
 0x389   :  { %v679_v42 = vadd.f32 1.0, %v884_v41 }
 0x38b   :  { %885 = vrcp.f32 %v679_v42 }
 0x398   :  { %v886_v43 = vpop.eup %885 }
 0x399   :  { %682 = vst.msk [vmem:[#allocation5] sm:$0x1] %vm681_vm10, %v886_v43 }
 0x39a   :  { %918 = shalt.err (!%p915_p9)
}
 0x39b   :  { %692 = dma.vmem_to_hbm [thread:$0]  %s690_s22, 16, %s1074_s8, [#allocation4]  }
 0x39c   :  { %929 = dma.done.wait [#allocation4], 16  }
 0x39d   :  { %930 = vsyncadd [#allocation4], 4294967280 }
 0x39e   :  { %696 = vsyncpa [#allocation3], 1 }
 0x39f   :  { %697 = vsyncpa [#allocation4], 1 }

</bundles_post_ra>
